<compile_context>
chip_gen: v7x
topology: tpu7x:2x2x1
jax: 0.10.0
libtpu: 0.0.40
codegen_flags: <defaults>
</compile_context>

<pallas_src>
import functools

import jax
import jax.numpy as jnp
from jax.experimental import pallas as pl
from jax.experimental.pallas import tpu as pltpu

_LANE = 128


def _bce_handtype_kernel(p_ref, y_ref, valid_ref, sel_ref, out_ref, *,
                         assume_binary_targets):
    # p_ref, y_ref : (TR, C*128)  class-interleaved, lane+sublane dense
    # valid_ref    : (TR, 128)
    # sel_ref      : (C*128, 128) constant; sel[k, j] = (k // C == j) / C
    # out_ref      : (TR, 128)
    p = p_ref[...].astype(jnp.float32)
    y = y_ref[...].astype(jnp.float32)
    valid = valid_ref[...].astype(jnp.float32)

    if assume_binary_targets:
        # Single EUP log per element (valid only for hard {0,1} targets).
        q = jnp.where(y > 0.5, p, 1.0 - p)
        bce = -jnp.maximum(jnp.log(q), -100.0)
    else:
        # PyTorch's binary_cross_entropy clamps each log term at -100.
        log_p = jnp.maximum(jnp.log(p), -100.0)
        log_1mp = jnp.maximum(jnp.log(1.0 - p), -100.0)
        bce = -(y * log_p + (1.0 - y) * log_1mp)        # (TR, C*128)

    # Per-sample mean over C + de-interleave in one MXU op (MXU is idle here).
    # NaNs in out-of-bounds rows of a partial block stay confined to their row.
    mean = jnp.dot(bce, sel_ref[...], preferred_element_type=jnp.float32)
    out_ref[...] = mean * valid                         # (TR, 128), lane-dense vst


def _xla_loss(hand_type_out, hand_type_gt, hand_type_valid):
    """Fused XLA fallback for tiny or lane-unaligned batches (also the reference)."""
    p = hand_type_out.astype(jnp.float32)
    y = hand_type_gt.astype(jnp.float32)
    log_p = jnp.maximum(jnp.log(p), -100.0)
    log_1mp = jnp.maximum(jnp.log(1.0 - p), -100.0)
    bce = -(y * log_p + (1.0 - y) * log_1mp)
    return jnp.mean(bce, axis=1) * hand_type_valid.astype(jnp.float32)


def bottleneck_hand_type_loss(hand_type_out, hand_type_gt, hand_type_valid, *,
                              tile_samples=65536, min_pallas_n=8192,
                              assume_binary_targets=False):
    """hand_type_out, hand_type_gt: (N, C); hand_type_valid: (N,). Returns (N,) f32."""
    N, C = hand_type_out.shape

    # Tiny batches: the fixed pallas_call launch dominates -> fused XLA is faster.
    # TODO(synk): N % 128 != 0 has no zero-copy lane-dense view; a Pallas path for
    # it would need either a padding pass or a separate tail kernel, so it also
    # takes the fused XLA path.
    if N < min_pallas_n or N % _LANE != 0:
        return _xla_loss(hand_type_out, hand_type_gt, hand_type_valid)

    rows = N // _LANE                       # 128 samples per row
    width = C * _LANE                       # class-interleaved lane width

    # Rows per grid step: big tiles amortize per-step pipeline overhead.  A
    # (512, C*128) f32 block is ~0.5 MiB (C=2); all double-buffered blocks
    # together stay at a few MiB -> fine within the 32 MiB scoped VMEM limit.
    tr_target = max(1, tile_samples // _LANE)
    if rows <= tr_target:
        tr = rows                           # full extent: always a legal block dim
    else:
        tr = max(8, (tr_target // 8) * 8)   # multiple of 8 (sublane tile)

    # Zero-copy views (row-major bitcasts; no HBM traffic, no dtype upcast --
    # inputs travel over the wire in their native dtype and are cast in-kernel).
    p2 = hand_type_out.reshape(rows, width)
    y2 = hand_type_gt.reshape(rows, width)
    v2 = hand_type_valid.reshape(rows, _LANE)

    # Constant de-interleave / mean-over-C matrix: sel[k, j] = (k // C == j) / C.
    lane_to_sample = jnp.arange(width, dtype=jnp.int32) // C
    sel = (lane_to_sample[:, None] ==
           jnp.arange(_LANE, dtype=jnp.int32)[None, :]).astype(jnp.float32) / C

    kernel = functools.partial(_bce_handtype_kernel,
                               assume_binary_targets=assume_binary_targets)

    out = pl.pallas_call(
        kernel,
        out_shape=jax.ShapeDtypeStruct((rows, _LANE), jnp.float32),
        grid=(pl.cdiv(rows, tr),),
        in_specs=[
            pl.BlockSpec((tr, width), lambda i: (i, 0)),
            pl.BlockSpec((tr, width), lambda i: (i, 0)),
            pl.BlockSpec((tr, _LANE), lambda i: (i, 0)),
            pl.BlockSpec((width, _LANE), lambda i: (0, 0)),   # resident constant
        ],
        out_specs=pl.BlockSpec((tr, _LANE), lambda i: (i, 0)),
        compiler_params=pltpu.CompilerParams(
            # TODO(synk): on v7x, verify megacore sharding engages with
            # "parallel"; otherwise switch this axis to pltpu.CORE_PARALLEL.
            dimension_semantics=("parallel",),
            vmem_limit_bytes=32 * 1024 * 1024,
        ),
    )(p2, y2, v2, sel)

    return out.reshape(N)


if __name__ == "__main__":
    key = jax.random.PRNGKey(0)
    k1, k2, k3 = jax.random.split(key, 3)

    C = 2  # left/right hand-type classes

    # Case 1: exercise the Pallas kernel at a small lane-aligned shape
    # (forced past the small-N dispatch).
    n1 = 512
    p1 = jax.random.uniform(k1, (n1, C), minval=0.05, maxval=0.95)
    y1 = jax.random.bernoulli(k2, 0.5, (n1, C)).astype(jnp.float32)
    v1 = jax.random.bernoulli(k3, 0.7, (n1,)).astype(jnp.float32)
    out1 = jax.block_until_ready(
        bottleneck_hand_type_loss(p1, y1, v1, min_pallas_n=0))
    ref1 = _xla_loss(p1, y1, v1)
    assert out1.shape == (n1,)
    assert jnp.allclose(out1, ref1, rtol=1e-5, atol=1e-5), (out1, ref1)

    # Case 2: partial last block (row count not a multiple of the row tile).
    n2 = 11 * 128
    p2 = jax.random.uniform(k1, (n2, C), minval=0.05, maxval=0.95)
    y2 = jax.random.bernoulli(k2, 0.5, (n2, C)).astype(jnp.float32)
    v2 = jax.random.bernoulli(k3, 0.7, (n2,)).astype(jnp.float32)
    out2 = jax.block_until_ready(
        bottleneck_hand_type_loss(p2, y2, v2, min_pallas_n=0, tile_samples=1024))
    ref2 = _xla_loss(p2, y2, v2)
    assert jnp.allclose(out2, ref2, rtol=1e-5, atol=1e-5), (out2, ref2)

    # Case 3: tiny batch goes through the fused-XLA dispatch path.
    n3 = 8
    p3 = jax.random.uniform(k1, (n3, C), minval=0.05, maxval=0.95)
    y3 = jax.random.bernoulli(k2, 0.5, (n3, C)).astype(jnp.float32)
    v3 = jax.random.bernoulli(k3, 0.7, (n3,)).astype(jnp.float32)
    out3 = jax.block_until_ready(bottleneck_hand_type_loss(p3, y3, v3))
    ref3 = _xla_loss(p3, y3, v3)
    assert jnp.allclose(out3, ref3, rtol=1e-5, atol=1e-5), (out3, ref3)

    print("KERNEL_OK")
</pallas_src>

<mosaic_0001>
module attributes {stable_mosaic.version = 11 : i64} {
  func.func @_bce_handtype_kernel(%arg0: i32, %arg1: memref<4x256xf32, #tpu.memory_space<vmem>>, %arg2: memref<4x256xf32, #tpu.memory_space<vmem>>, %arg3: memref<4x128xf32, #tpu.memory_space<vmem>>, %arg4: memref<256x128xf32, #tpu.memory_space<vmem>>, %arg5: memref<4x128xf32, #tpu.memory_space<vmem>>) attributes {dimension_semantics = [#tpu.dimension_semantics<parallel>], iteration_bounds = array<i64: 1>, scalar_prefetch = 0 : i64, scratch_operands = 0 : i64, tpu.core_type = #tpu.core_type<tc>, window_params = [{transform_indices = @transform_0, window_bounds = array<i64: 4, 256>}, {transform_indices = @transform_1, window_bounds = array<i64: 4, 256>}, {transform_indices = @transform_2, window_bounds = array<i64: 4, 128>}, {pipeline_mode = #tpu.pipeline_mode<synchronous>, transform_indices = @transform_3, window_bounds = array<i64: 256, 128>}, {transform_indices = @transform_4, window_bounds = array<i64: 4, 128>}]} {
    %c0 = arith.constant 0 : index
    %c0_0 = arith.constant 0 : index
    %0 = vector.load %arg1[%c0, %c0_0] : memref<4x256xf32, #tpu.memory_space<vmem>>, vector<4x256xf32>
    %c0_1 = arith.constant 0 : index
    %c0_2 = arith.constant 0 : index
    %1 = vector.load %arg2[%c0_1, %c0_2] : memref<4x256xf32, #tpu.memory_space<vmem>>, vector<4x256xf32>
    %c0_3 = arith.constant 0 : index
    %c0_4 = arith.constant 0 : index
    %2 = vector.load %arg3[%c0_3, %c0_4] : memref<4x128xf32, #tpu.memory_space<vmem>>, vector<4x128xf32>
    %3 = math.log %0 : vector<4x256xf32>
    %cst = arith.constant -1.000000e+02 : f32
    %4 = vector.broadcast %cst : f32 to vector<4x256xf32>
    %5 = arith.maximumf %3, %4 : vector<4x256xf32>
    %cst_5 = arith.constant 1.000000e+00 : f32
    %6 = vector.broadcast %cst_5 : f32 to vector<4x256xf32>
    %7 = arith.subf %6, %0 : vector<4x256xf32>
    %8 = math.log %7 : vector<4x256xf32>
    %cst_6 = arith.constant -1.000000e+02 : f32
    %9 = vector.broadcast %cst_6 : f32 to vector<4x256xf32>
    %10 = arith.maximumf %8, %9 : vector<4x256xf32>
    %11 = arith.mulf %1, %5 : vector<4x256xf32>
    %cst_7 = arith.constant 1.000000e+00 : f32
    %12 = vector.broadcast %cst_7 : f32 to vector<4x256xf32>
    %13 = arith.subf %12, %1 : vector<4x256xf32>
    %14 = arith.mulf %13, %10 : vector<4x256xf32>
    %15 = arith.addf %11, %14 : vector<4x256xf32>
    %cst_8 = arith.constant 0.000000e+00 : f32
    %16 = vector.broadcast %cst_8 : f32 to vector<4x256xf32>
    %17 = arith.subf %16, %15 : vector<4x256xf32>
    %c0_9 = arith.constant 0 : index
    %c0_10 = arith.constant 0 : index
    %18 = vector.load %arg4[%c0_9, %c0_10] : memref<256x128xf32, #tpu.memory_space<vmem>>, vector<256x128xf32>
    %cst_11 = arith.constant dense<0.000000e+00> : vector<4x128xf32>
    %19 = tpu.matmul %17, %18, %cst_11 {dimension_numbers = #tpu.dot_dimension_numbers<[1], [0], [0], [1], [0, 0, 1, 1], [], []>} : vector<4x256xf32>, vector<256x128xf32>, vector<4x128xf32> -> vector<4x128xf32>
    %20 = arith.mulf %19, %2 : vector<4x128xf32>
    %c0_12 = arith.constant 0 : index
    %c0_13 = arith.constant 0 : index
    %21 = vector.load %arg5[%c0_12, %c0_13] : memref<4x128xf32, #tpu.memory_space<vmem>>, vector<4x128xf32>
    tpu.vector_store %arg5[%c0_12, %c0_13], %20 {strides = array<i32>} : memref<4x128xf32, #tpu.memory_space<vmem>>, vector<4x128xf32>,
    return
  }
  func.func @transform_0(%arg0: i32) -> (i32, i32) {
    %c0_i32 = arith.constant 0 : i32
    %c0_i32_0 = arith.constant 0 : i32
    return %arg0, %c0_i32 : i32, i32
  }
  func.func @transform_1(%arg0: i32) -> (i32, i32) {
    %c0_i32 = arith.constant 0 : i32
    %c0_i32_0 = arith.constant 0 : i32
    return %arg0, %c0_i32 : i32, i32
  }
  func.func @transform_2(%arg0: i32) -> (i32, i32) {
    %c0_i32 = arith.constant 0 : i32
    %c0_i32_0 = arith.constant 0 : i32
    return %arg0, %c0_i32 : i32, i32
  }
  func.func @transform_3(%arg0: i32) -> (i32, i32) {
    %c0_i32 = arith.constant 0 : i32
    %c0_i32_0 = arith.constant 0 : i32
    %c0_i32_1 = arith.constant 0 : i32
    return %c0_i32, %c0_i32_0 : i32, i32
  }
  func.func @transform_4(%arg0: i32) -> (i32, i32) {
    %c0_i32 = arith.constant 0 : i32
    %c0_i32_0 = arith.constant 0 : i32
    return %arg0, %c0_i32 : i32, i32
  }
}

</mosaic_0001>

<bundles_post_ra>
// kernel: tpu_custom_call.1
= control target key start
LH: loop header
LB: loop body
LE: loop exit
PB: predicated region body
PF: predicated region fallthrough
CT: control target
= control target key end

     0   :  { %9 = vsyncpa [#allocation3], 0  ;;  %s446_s0 = inlined_call_operand.hbm [shape: f32[4,256], index: 0, kind: input, shape index: {}]   ;;  %s447_s1 = inlined_call_operand.hbm [shape: f32[4,256], index: 1, kind: input, shape index: {}]   ;;  %s448_s2 = inlined_call_operand.vmem [shape: f32[4,128], index: 2, kind: input, shape index: {}]   ;;  %s449_s3 = inlined_call_operand.hbm [shape: f32[256,128], index: 3, kind: input, shape index: {}]   ;;  %s450_s4 = inlined_call_operand.hbm [shape: f32[4,128], index: 4, kind: output, shape index: {}]  }
   0x1   :  { %10 = vsyncpa [#allocation6], 0 }
   0x2   :  { %11 = vsyncpa [#allocation4], 0  ;;  %s364_s15 = smov [#allocation5]   ;;  %s365_s17 = smov [#allocation2]  }
   0x3   :  { %s28_s16 = sshll.u32 %s364_s15, 4  ;;  %s18_s18 = sshll.u32 %s365_s17, 4  ;;  %s29_s16 = int_to_ptr.vmem [resolvable:$true] %s28_s16  ;;  %s19_s18 = int_to_ptr.vmem [resolvable:$true] %s18_s18 }
   0x4   :  { %s270_s21 = scalar_lea.hbm %s447_s1, 128 }
   0x5   :  { %p271_p0 = scmp.ne.s32.totalorder %s447_s1, %s270_s21  ;;  %p274_p1 = scmp.lt.u32.totalorder %s270_s21, %s447_s1 }
   0x7   :  { %p276_p2 = pnand %p274_p1, %p271_p0 }
   0x9   :  { %279 = shalt.err (!%p276_p2)
}
   0xa   :  { %s280_s26 = scalar_lea.vmem %s29_s16, 128  ;;  %p285_p4 = scmp.lt.s32.totalorder %s29_s16, %s29_s16 }
   0xb   :  { %p281_p3 = scmp.ne.s32.totalorder %s29_s16, %s280_s26  ;;  %p286_p5 = scmp.lt.s32.totalorder %s280_s26, %s280_s26 }
   0xd   :  { %p287_p6 = por %p286_p5, %p285_p4 }
   0xf   :  { %p288_p7 = pnand %p287_p6, %p281_p3 }
  0x11   :  { %291 = shalt.err (!%p288_p7)
}
  0x12   :  { %31 = dma.hbm_to_vmem [thread:$0]  %s447_s1, 128, %s29_s16, [#allocation6]  }
  0x13   :  { %s292_s5 = scalar_lea.hbm %s446_s0, 128 }
  0x14   :  { %p293_p8 = scmp.ne.s32.totalorder %s446_s0, %s292_s5  ;;  %p296_p9 = scmp.lt.u32.totalorder %s292_s5, %s446_s0 }
  0x16   :  { %p298_p10 = pnand %p296_p9, %p293_p8 }
  0x18   :  { %301 = shalt.err (!%p298_p10)
}
  0x19   :  { %s302_s10 = scalar_lea.vmem %s19_s18, 128  ;;  %p307_p12 = scmp.lt.s32.totalorder %s19_s18, %s19_s18 }
  0x1a   :  { %p303_p11 = scmp.ne.s32.totalorder %s19_s18, %s302_s10  ;;  %p308_p13 = scmp.lt.s32.totalorder %s302_s10, %s302_s10 }
  0x1c   :  { %p309_p0 = por %p308_p13, %p307_p12 }
  0x1e   :  { %p310_p1 = pnand %p309_p0, %p303_p11 }
  0x20   :  { %313 = shalt.err (!%p310_p1)
}
  0x21   :  { %21 = dma.hbm_to_vmem [thread:$0]  %s446_s0, 128, %s19_s18, [#allocation3]  }
  0x22   :  { %s366_s12 = smov [#allocation7]   ;;  %s314_s16 = scalar_lea.hbm %s449_s3, 4096 }
  0x23   :  { %s39_s13 = sshll.u32 %s366_s12, 4  ;;  %p315_p2 = scmp.ne.s32.totalorder %s449_s3, %s314_s16  ;;  %s40_s13 = int_to_ptr.vmem [resolvable:$true] %s39_s13 }
  0x24   :  { %p318_p3 = scmp.lt.u32.totalorder %s314_s16, %s449_s3 }
  0x26   :  { %p320_p4 = pnand %p318_p3, %p315_p2 }
  0x28   :  { %323 = shalt.err (!%p320_p4)
}
  0x29   :  { %s324_s22 = scalar_lea.vmem %s40_s13, 4096  ;;  %p329_p6 = scmp.lt.s32.totalorder %s40_s13, %s40_s13 }
  0x2a   :  { %p325_p5 = scmp.ne.s32.totalorder %s40_s13, %s324_s22  ;;  %p330_p7 = scmp.lt.s32.totalorder %s324_s22, %s324_s22 }
  0x2c   :  { %p331_p8 = por %p330_p7, %p329_p6 }
  0x2e   :  { %p332_p9 = pnand %p331_p8, %p325_p5 }
  0x30   :  { %335 = shalt.err (!%p332_p9)
}
  0x31   :  { %s367_s0 = smov 128   ;;  %s368_s18 = smov 8  }
  0x32   :  { %45 = dma.hbm_to_vmem [thread:$0]  %s449_s3, 4096, %s40_s13, [#allocation6], %s367_s0, %s367_s0, %s368_s18  }
  0x33   :  { %358 = dma.done.wait [#allocation3], 128  }
  0x34   :  { %359 = vsyncadd [#allocation3], 4294967168 }
  0x35   :  { %360 = dma.done.wait [#allocation6], 4224  }
  0x36   :  { %361 = vsyncadd [#allocation6], 4294963072  ;;  %v86_v0 = vld [vmem:[#allocation7 + $0x80] sm:$0xff]  ;;  %v87_v1 = vld [vmem:[#allocation7 + $0x88] sm:$0xff]  ;;  %s369_s26 = smov [#allocation8]  }
  0x37   :  { %v70_v2 = vld [vmem:[#allocation7] sm:$0xff]  ;;  %v228_v3 = vpack.c.bf16 %v87_v1, %v86_v0  ;;  %v71_v4 = vld [vmem:[#allocation7 + $0x8] sm:$0xff]  ;;  %v88_v5 = vld [vmem:[#allocation7 + $0x90] sm:$0xff]  ;;  %s183_s27 = sshll.u32 %s369_s26, 4  ;;  %s184_s27 = int_to_ptr.vmem [resolvable:$true] %s183_s27 }
  0x38   :  { %v89_v6 = vld [vmem:[#allocation7 + $0x98] sm:$0xff]  ;;  %v230_v7 = vpack.c.bf16 %v71_v4, %v70_v2  ;;  %v72_v9 = vld [vmem:[#allocation7 + $0x10] sm:$0xff]  ;;  %v90_v11 = vld [vmem:[#allocation7 + $0xa0] sm:$0xff]  ;;  %s336_s28 = scalar_lea.vmem %s184_s27, 64  ;;  %p341_p11 = scmp.lt.s32.totalorder %s184_s27, %s184_s27 }
  0x39   :  { %v232_v8 = vpack.c.bf16 %v89_v6, %v88_v5  ;;  %v73_v10 = vld [vmem:[#allocation7 + $0x18] sm:$0xff]  ;;  %229 = vmatprep.subr.bf16.mxu0 %v228_v3  ;;  %v91_v12 = vld [vmem:[#allocation7 + $0xa8] sm:$0xff]  ;;  %v74_v15 = vld [vmem:[#allocation7 + $0x20] sm:$0xff]  ;;  %p337_p10 = scmp.ne.s32.totalorder %s184_s27, %s336_s28  ;;  %p342_p12 = scmp.lt.s32.totalorder %s336_s28, %s336_s28 }
  0x3a   :  { %231 = vmatpush3.bf16.msra.mxu0 %v230_v7  ;;  %v234_v13 = vpack.c.bf16 %v73_v10, %v72_v9  ;;  %v236_v14 = vpack.c.bf16 %v91_v12, %v90_v11  ;;  %v75_v16 = vld [vmem:[#allocation7 + $0x28] sm:$0xff]  ;;  %v92_v17 = vld [vmem:[#allocation7 + $0xb0] sm:$0xff]  ;;  %v93_v18 = vld [vmem:[#allocation7 + $0xb8] sm:$0xff] }
  0x3b   :  { %233 = vmatprep.subr.bf16.mxu0 %v232_v8  ;;  %v238_v19 = vpack.c.bf16 %v75_v16, %v74_v15  ;;  %v240_v20 = vpack.c.bf16 %v93_v18, %v92_v17  ;;  %v76_v21 = vld [vmem:[#allocation7 + $0x30] sm:$0xff]  ;;  %v77_v22 = vld [vmem:[#allocation7 + $0x38] sm:$0xff]  ;;  %v94_v23 = vld [vmem:[#allocation7 + $0xc0] sm:$0xff]  ;;  %p343_p13 = por %p342_p12, %p341_p11 }
  0x3c   :  { %v95_v24 = vld [vmem:[#allocation7 + $0xc8] sm:$0xff]  ;;  %v55_v25 = vld [vmem:[#allocation2] sm:$0xff]  ;;  %v242_v27 = vpack.c.bf16 %v77_v22, %v76_v21  ;;  %v78_v29 = vld [vmem:[#allocation7 + $0x40] sm:$0xff] }
  0x3d   :  { %266 = vlog2.f32 %v55_v25  ;;  %v61_v26 = vsub.f32 1.0, %v55_v25  ;;  %v244_v28 = vpack.c.bf16 %v95_v24, %v94_v23  ;;  %v79_v30 = vld [vmem:[#allocation7 + $0x48] sm:$0xff]  ;;  %v96_v31 = vld [vmem:[#allocation7 + $0xd0] sm:$0xff]  ;;  %v97_v32 = vld [vmem:[#allocation7 + $0xd8] sm:$0xff]  ;;  %p344_p0 = pnand %p343_p13, %p337_p10 }
  0x3e   :  { %235 = vmatpush3.bf16.msra.mxu0 %v234_v13  ;;  %v246_v33 = vpack.c.bf16 %v79_v30, %v78_v29  ;;  %v248_v34 = vpack.c.bf16 %v97_v32, %v96_v31  ;;  %v80_v35 = vld [vmem:[#allocation7 + $0x50] sm:$0xff]  ;;  %v81_v36 = vld [vmem:[#allocation7 + $0x58] sm:$0xff]  ;;  %v98_v37 = vld [vmem:[#allocation7 + $0xe0] sm:$0xff] }
  0x3f   :  { %237 = vmatprep.subr.bf16.mxu0 %v236_v14  ;;  %268 = vlog2.f32 %v61_v26  ;;  %v99_v38 = vld [vmem:[#allocation7 + $0xe8] sm:$0xff]  ;;  %v250_v39 = vpack.c.bf16 %v81_v36, %v80_v35  ;;  %v82_v42 = vld [vmem:[#allocation7 + $0x60] sm:$0xff]  ;;  %v56_v44 = vld [vmem:[#allocation5] sm:$0xff] }
  0x40   :  { %v252_v41 = vpack.c.bf16 %v99_v38, %v98_v37  ;;  %v83_v43 = vld [vmem:[#allocation7 + $0x68] sm:$0xff]  ;;  %v100_v45 = vld [vmem:[#allocation7 + $0xf0] sm:$0xff]  ;;  %v101_v46 = vld [vmem:[#allocation7 + $0xf8] sm:$0xff]  ;;  %v66_v52 = vsub.f32 1.0, %v56_v44 }
  0x41   :  { %v254_v49 = vpack.c.bf16 %v83_v43, %v82_v42  ;;  %v256_v53 = vpack.c.bf16 %v101_v46, %v100_v45  ;;  %v84_v54 = vld [vmem:[#allocation7 + $0x70] sm:$0xff]  ;;  %v85_v55 = vld [vmem:[#allocation7 + $0x78] sm:$0xff] }
  0x42   :  { %239 = vmatpush3.bf16.msra.mxu0 %v238_v19  ;;  %v258_v58 = vpack.c.bf16 %v85_v55, %v84_v54  ;;  %v57_v0 = vld [vmem:[%s448_s2] sm:$0xf] }
  0x43   :  { %241 = vmatprep.subr.bf16.mxu0 %v240_v20 }
  0x46   :  { %243 = vmatpush3.bf16.msra.mxu0 %v242_v27 }
  0x47   :  { %245 = vmatprep.subr.bf16.mxu0 %v244_v28  ;;  %v267_v40 = vpop.eup %266 }
  0x48   :  { %v59_v47 = vmul.f32 0.6931472, %v267_v40 }
  0x49   :  { %v269_v48 = vpop.eup %268 }
  0x4a   :  { %247 = vmatpush3.bf16.msra.mxu0 %v246_v33  ;;  %v60_v50 = vmax.f32 %v59_v47, -100.0  ;;  %v63_v51 = vmul.f32 0.6931472, %v269_v48 }
  0x4b   :  { %249 = vmatprep.subr.bf16.mxu0 %v248_v34 }
  0x4c   :  { %v64_v56 = vmax.f32 %v63_v51, -100.0  ;;  %v65_v57 = vmul.f32 %v60_v50, %v56_v44 }
  0x4e   :  { %251 = vmatpush3.bf16.msra.mxu0 %v250_v39  ;;  %v67_v59 = vmul.f32 %v66_v52, %v64_v56 }
  0x4f   :  { %253 = vmatprep.subr.bf16.mxu0 %v252_v41 }
  0x50   :  { %v68_v60 = vadd.f32 %v67_v59, %v65_v57 }
  0x52   :  { %255 = vmatpush3.bf16.msra.mxu0 %v254_v49  ;;  %v69_v61 = vsub.f32 0.0, %v68_v60 }
  0x53   :  { %257 = vmatprep.subr.bf16.mxu0 %v256_v53 }
  0x54   :  { %v103_v62 = vcombine.high %v69_v61, %v69_v61 }
  0x56   :  { %259 = vmatpush3.bf16.msra.mxu0 %v258_v58  ;;  %169 = vmatprep.mubr.f32.mxu0 %v103_v62 }
  0x59   :  { %170 = vmatmul.mubr.f32.vlgmr.msra.gmra.mrb[0].mxu0 %v69_v61 }
 0x12c   :  { %v225_v63 = vpop.f32.mrb[0].mxu0 }
 0x12d   :  { %v226_v1 = vpop.f32.mrb[1].mxu0 }
 0x12e   :  { %v227_v2 = vadd.f32 %v226_v1, %v225_v63 }
 0x130   :  { %v175_v3 = vmul.f32 %v227_v2, %v57_v0 }
 0x132   :  { %176 = vst [vmem:[#allocation8] sm:$0xf] %v175_v3 }
 0x133   :  { %347 = shalt.err (!%p344_p0)
}
 0x134   :  { %s348_s5 = scalar_lea.hbm %s450_s4, 64 }
 0x135   :  { %p349_p1 = scmp.ne.s32.totalorder %s450_s4, %s348_s5  ;;  %p352_p2 = scmp.lt.u32.totalorder %s348_s5, %s450_s4 }
 0x137   :  { %p354_p3 = pnand %p352_p2, %p349_p1 }
 0x139   :  { %357 = shalt.err (!%p354_p3)
}
 0x13a   :  { %186 = dma.vmem_to_hbm [thread:$0]  %s184_s27, 64, %s450_s4, [#allocation4]  }
 0x13b   :  { %362 = dma.done.wait [#allocation4], 64  }
 0x13c   :  { %363 = vsyncadd [#allocation4], 4294967232 }
 0x13d   :  { %190 = vsyncpa [#allocation3], 1 }
 0x13e   :  { %191 = vsyncpa [#allocation6], 1 }
 0x13f   :  { %192 = vsyncpa [#allocation4], 1 }

</bundles_post_ra>
